<compile_context>
chip_gen: v6e
topology: v6e:2x2x1
jax: 0.10.0
libtpu: 0.0.40
codegen_flags: <defaults>
</compile_context>

<pallas_src>
import functools

import jax
import jax.numpy as jnp
from jax.experimental import pallas as pl
from jax.experimental.pallas import tpu as pltpu

NOISE_MU = 1.0
MOMENTUM = 0.9
LANE = 128


def _round_up(x, m):
    return (x + m - 1) // m * m


# ----------------------------------------------------------------------------
# Train-mode kernel: x network and x_star (privileged) network fused per layer
# (inputs stacked along batch, weights concatenated along the output axis),
# plus the reparameterized multiplicative "dropout".
# ----------------------------------------------------------------------------
def _train_kernel(
    x_ref, xs_ref, eps1_ref, eps2_ref,
    w1c_ref, b1c_ref,          # [w1 | ws1] (F, 2*FC) bf16 , [b1 | bs1] (1, 2*FC) f32
    w2c_ref, b2c_ref,          # [w2 | ws2] (FC, 2*FC) bf16, [b2 | bs2] (1, 2*FC) f32
    w3_ref, b3_ref,            # padded (FC, CPAD) bf16, (1, CPAD) f32
    out_ref, sig1_ref, sig2_ref,
):
    tm = x_ref.shape[0]
    fc = sig1_ref.shape[1]

    # ---- layer 1: one fused MXU pass for x_fc1 and x_star_fc1 ----
    # Stack in f32 (8-row aligned), cast to bf16 only for the matmul.
    xcat = jnp.concatenate([x_ref[...], xs_ref[...]], axis=0)          # (2tm, F) f32
    a1 = jnp.dot(xcat.astype(jnp.bfloat16), w1c_ref[...],
                 preferred_element_type=jnp.float32) + b1c_ref[...]
    a1 = jnp.maximum(a1, 0.0)                                          # (2tm, 2fc) f32
    h1 = a1[:tm, :fc]           # x  @ w1  + b1   (relu'd)
    hs1 = a1[tm:, fc:]          # xs @ ws1 + bs1  (relu'd)  == sigma1

    sig1_ref[...] = hs1
    h1n = h1 * (NOISE_MU + eps1_ref[...] * hs1)                        # vanilla reparam

    # ---- layer 2: one fused MXU pass for x_fc2 and x_star_fc2 ----
    hcat = jnp.concatenate([h1n, hs1], axis=0)                         # (2tm, fc) f32
    a2 = jnp.dot(hcat.astype(jnp.bfloat16), w2c_ref[...],
                 preferred_element_type=jnp.float32) + b2c_ref[...]
    a2 = jnp.maximum(a2, 0.0)                                          # (2tm, 2fc) f32
    h2 = a2[:tm, :fc]
    hs2 = a2[tm:, fc:]          # == sigma2

    sig2_ref[...] = hs2
    h2n = h2 * (NOISE_MU + eps2_ref[...] * hs2)

    # ---- layer 3 (x_fc3, no activation), lane-padded output ----
    out_ref[...] = jnp.dot(h2n.astype(jnp.bfloat16), w3_ref[...],
                           preferred_element_type=jnp.float32) + b3_ref[...]


# ----------------------------------------------------------------------------
# Eval-mode kernel (x_star is None, use_identity_at_test_time=True):
# plain fc1 -> relu -> fc2 -> relu -> fc3 (lane-padded logits).
# ----------------------------------------------------------------------------
def _eval_kernel(x_ref, w1_ref, b1_ref, w2_ref, b2_ref, w3_ref, b3_ref, out_ref):
    x = x_ref[...].astype(jnp.bfloat16)
    h1 = jnp.maximum(
        jnp.dot(x, w1_ref[...], preferred_element_type=jnp.float32) + b1_ref[...], 0.0)
    h2 = jnp.maximum(
        jnp.dot(h1.astype(jnp.bfloat16), w2_ref[...],
                preferred_element_type=jnp.float32) + b2_ref[...], 0.0)
    out_ref[...] = jnp.dot(h2.astype(jnp.bfloat16), w3_ref[...],
                           preferred_element_type=jnp.float32) + b3_ref[...]


# ----------------------------------------------------------------------------
# Parameters (deterministic init mirroring _initialize_weights:
# weight ~ N(0, 0.01), bias = 0, running_std buffers = 1).  Stored f32; the
# wrapper produces the fused / padded bf16 kernel operands.
# ----------------------------------------------------------------------------
def init_params(key, flat_feat, fc_size, num_classes):
    def lin(k, fin, fout):
        # PyTorch stores (out, in); we store transposed (in, out).
        w = (0.01 * jax.random.normal(k, (fout, fin), jnp.float32)).T
        b = jnp.zeros((1, fout), jnp.float32)
        return w, b

    ks = jax.random.split(key, 6)
    return {
        "x_fc1": lin(ks[0], flat_feat, fc_size),
        "x_fc2": lin(ks[1], fc_size, fc_size),
        "x_fc3": lin(ks[2], fc_size, num_classes),
        "x_star_fc1": lin(ks[3], flat_feat, fc_size),
        "x_star_fc2": lin(ks[4], fc_size, fc_size),
        "x_star_fc3": lin(ks[5], fc_size, num_classes),  # unused in forward
        "running_std_1": jnp.ones((1, fc_size), jnp.float32),
        "running_std_2": jnp.ones((1, fc_size), jnp.float32),
    }


def _batch_tiling(n):
    """Pick (padded_batch, tile_m): 128-row tiles for big batches, 8-aligned otherwise."""
    if n >= 128:
        n_pad = _round_up(n, 128)
        return n_pad, 128
    n_pad = _round_up(n, 8)
    return n_pad, n_pad


# ----------------------------------------------------------------------------
# Wrappers
# ----------------------------------------------------------------------------
@functools.partial(jax.jit, static_argnames=("train",))
def forward(params, x, x_star, noise_key, train):
    """Mirrors FcOnlyDualNetworksVGG.forward.

    Returns (logits, sigmas, new_running_std_1, new_running_std_2).
    In eval mode sigmas is None and the buffers are returned unchanged.
    """
    n = x.shape[0]
    xf = x.reshape(n, -1).astype(jnp.float32)
    feat = xf.shape[1]

    (w1, b1) = params["x_fc1"]
    (w2, b2) = params["x_fc2"]
    (w3, b3) = params["x_fc3"]
    fc_size = w1.shape[1]
    num_classes = w3.shape[1]
    c_pad = _round_up(num_classes, LANE)

    # Lane-dense logits: zero-pad w3/b3 to a multiple of 128 output lanes.
    w3p = jnp.zeros((fc_size, c_pad), jnp.float32).at[:, :num_classes].set(w3)
    w3p = w3p.astype(jnp.bfloat16)
    b3p = jnp.zeros((1, c_pad), jnp.float32).at[:, :num_classes].set(b3)

    n_pad, tm = _batch_tiling(n)
    nb = n_pad // tm
    if n_pad != n:
        xf = jnp.pad(xf, ((0, n_pad - n), (0, 0)))

    cparams = pltpu.CompilerParams(dimension_semantics=("parallel",))
    w_spec2 = lambda shape: pl.BlockSpec(shape, lambda i: (0, 0))
    row_spec = lambda d: pl.BlockSpec((tm, d), lambda i: (i, 0))

    if (not train) or (x_star is None):
        out = pl.pallas_call(
            _eval_kernel,
            grid=(nb,),
            in_specs=[
                row_spec(feat),
                w_spec2((feat, fc_size)), w_spec2((1, fc_size)),
                w_spec2((fc_size, fc_size)), w_spec2((1, fc_size)),
                w_spec2((fc_size, c_pad)), w_spec2((1, c_pad)),
            ],
            out_specs=row_spec(c_pad),
            out_shape=jax.ShapeDtypeStruct((n_pad, c_pad), jnp.float32),
            compiler_params=cparams,
        )(xf, w1.astype(jnp.bfloat16), b1, w2.astype(jnp.bfloat16), b2, w3p, b3p)
        logits = out[:n, :num_classes]
        return logits, None, params["running_std_1"], params["running_std_2"]

    xsf = x_star.reshape(n, -1).astype(jnp.float32)
    if n_pad != n:
        xsf = jnp.pad(xsf, ((0, n_pad - n), (0, 0)))

    (ws1, bs1) = params["x_star_fc1"]
    (ws2, bs2) = params["x_star_fc2"]

    # Fused per-layer weight streams: [w | w_star] along the output axis.
    w1c = jnp.concatenate([w1, ws1], axis=1).astype(jnp.bfloat16)
    b1c = jnp.concatenate([b1, bs1], axis=1)
    w2c = jnp.concatenate([w2, ws2], axis=1).astype(jnp.bfloat16)
    b2c = jnp.concatenate([b2, bs2], axis=1)

    k1, k2 = jax.random.split(noise_key)
    eps1 = jax.random.normal(k1, (n, fc_size), jnp.float32)
    eps2 = jax.random.normal(k2, (n, fc_size), jnp.float32)
    if n_pad != n:
        eps1 = jnp.pad(eps1, ((0, n_pad - n), (0, 0)))
        eps2 = jnp.pad(eps2, ((0, n_pad - n), (0, 0)))

    out_shapes = (
        jax.ShapeDtypeStruct((n_pad, c_pad), jnp.float32),     # logits (padded)
        jax.ShapeDtypeStruct((n_pad, fc_size), jnp.float32),   # sigma1
        jax.ShapeDtypeStruct((n_pad, fc_size), jnp.float32),   # sigma2
    )
    out, sig1, sig2 = pl.pallas_call(
        _train_kernel,
        grid=(nb,),
        in_specs=[
            row_spec(feat), row_spec(feat), row_spec(fc_size), row_spec(fc_size),
            w_spec2((feat, 2 * fc_size)), w_spec2((1, 2 * fc_size)),
            w_spec2((fc_size, 2 * fc_size)), w_spec2((1, 2 * fc_size)),
            w_spec2((fc_size, c_pad)), w_spec2((1, c_pad)),
        ],
        out_specs=(row_spec(c_pad), row_spec(fc_size), row_spec(fc_size)),
        out_shape=out_shapes,
        compiler_params=cparams,
    )(xf, xsf, eps1, eps2, w1c, b1c, w2c, b2c, w3p, b3p)

    logits = out[:n, :num_classes]
    sigma1 = sig1[:n]
    sigma2 = sig2[:n]

    # Running-std EMA (buffer update) from the already-materialized sigmas.
    new_rs1 = MOMENTUM * params["running_std_1"] + (1.0 - MOMENTUM) * jnp.mean(
        sigma1, axis=0, keepdims=True)
    new_rs2 = MOMENTUM * params["running_std_2"] + (1.0 - MOMENTUM) * jnp.mean(
        sigma2, axis=0, keepdims=True)
    return logits, (sigma1, sigma2), new_rs1, new_rs2


# ----------------------------------------------------------------------------
# Pure-JAX references (same bf16 quantization points as the kernels).
# ----------------------------------------------------------------------------
def _bf(a):
    return a.astype(jnp.bfloat16)


def _reference_train(params, x, x_star, eps1, eps2):
    n = x.shape[0]
    xf = x.reshape(n, -1).astype(jnp.float32)
    xsf = x_star.reshape(n, -1).astype(jnp.float32)
    (w1, b1), (w2, b2), (w3, b3) = params["x_fc1"], params["x_fc2"], params["x_fc3"]
    (ws1, bs1), (ws2, bs2) = params["x_star_fc1"], params["x_star_fc2"]

    hs1 = jnp.maximum(jnp.dot(_bf(xsf), _bf(ws1), preferred_element_type=jnp.float32) + bs1, 0.0)
    h1 = jnp.maximum(jnp.dot(_bf(xf), _bf(w1), preferred_element_type=jnp.float32) + b1, 0.0)
    h1n = h1 * (NOISE_MU + eps1 * hs1)
    hs2 = jnp.maximum(jnp.dot(_bf(hs1), _bf(ws2), preferred_element_type=jnp.float32) + bs2, 0.0)
    h2 = jnp.maximum(jnp.dot(_bf(h1n), _bf(w2), preferred_element_type=jnp.float32) + b2, 0.0)
    h2n = h2 * (NOISE_MU + eps2 * hs2)
    out = jnp.dot(_bf(h2n), _bf(w3), preferred_element_type=jnp.float32) + b3
    rs1 = MOMENTUM * params["running_std_1"] + (1 - MOMENTUM) * hs1.mean(0, keepdims=True)
    rs2 = MOMENTUM * params["running_std_2"] + (1 - MOMENTUM) * hs2.mean(0, keepdims=True)
    return out, hs1, hs2, rs1, rs2


def _reference_eval(params, x):
    n = x.shape[0]
    xf = x.reshape(n, -1).astype(jnp.float32)
    (w1, b1), (w2, b2), (w3, b3) = params["x_fc1"], params["x_fc2"], params["x_fc3"]
    h1 = jnp.maximum(jnp.dot(_bf(xf), _bf(w1), preferred_element_type=jnp.float32) + b1, 0.0)
    h2 = jnp.maximum(jnp.dot(_bf(h1), _bf(w2), preferred_element_type=jnp.float32) + b2, 0.0)
    return jnp.dot(_bf(h2), _bf(w3), preferred_element_type=jnp.float32) + b3


if __name__ == "__main__":
    # Small shapes implied by the module: image_size=32 -> receptive field 1,
    # flattened feature = 512*1*1 = 512; fc_size=256; num_classes=10; batch=8.
    IMAGE_SIZE = 32
    RF = IMAGE_SIZE // 2 ** 5
    FLAT = 512 * RF * RF          # 512
    FC_SIZE = 256
    NUM_CLASSES = 10
    N = 8

    root = jax.random.PRNGKey(0)
    k_param, k_x, k_xs, k_noise = jax.random.split(root, 4)

    params = init_params(k_param, FLAT, FC_SIZE, NUM_CLASSES)

    # VGG feature maps in NCHW.
    x = jax.random.normal(k_x, (N, 512, RF, RF), jnp.float32)
    x_star = jax.random.normal(k_xs, (N, 512, RF, RF), jnp.float32)

    # --- train-mode forward ---
    out_tr, sigmas, new_rs1, new_rs2 = forward(params, x, x_star, k_noise, train=True)
    out_tr = jax.block_until_ready(out_tr)
    assert out_tr.shape == (N, NUM_CLASSES)

    # reference check (reuse the same eps the wrapper derives from k_noise)
    k1, k2 = jax.random.split(k_noise)
    eps1 = jax.random.normal(k1, (N, FC_SIZE), jnp.float32)
    eps2 = jax.random.normal(k2, (N, FC_SIZE), jnp.float32)
    ref_out, ref_s1, ref_s2, ref_rs1, ref_rs2 = _reference_train(params, x, x_star, eps1, eps2)
    assert jnp.allclose(out_tr, ref_out, atol=1e-3, rtol=1e-3)
    assert jnp.allclose(sigmas[0], ref_s1, atol=1e-3, rtol=1e-3)
    assert jnp.allclose(sigmas[1], ref_s2, atol=1e-3, rtol=1e-3)
    assert jnp.allclose(new_rs1, ref_rs1, atol=1e-3, rtol=1e-3)
    assert jnp.allclose(new_rs2, ref_rs2, atol=1e-3, rtol=1e-3)

    # --- eval-mode forward (x_star=None -> identity at test time) ---
    out_ev, sig_ev, rs1_ev, rs2_ev = forward(params, x, None, k_noise, train=False)
    out_ev = jax.block_until_ready(out_ev)
    assert sig_ev is None
    assert out_ev.shape == (N, NUM_CLASSES)
    ref_ev = _reference_eval(params, x)
    assert jnp.allclose(out_ev, ref_ev, atol=1e-3, rtol=1e-3)
    assert jnp.allclose(rs1_ev, params["running_std_1"])
    assert jnp.allclose(rs2_ev, params["running_std_2"])

    print("KERNEL_OK")
</pallas_src>

<mosaic_0001>
module attributes {stable_mosaic.version = 11 : i64} {
  func.func @_train_kernel(%arg0: i32, %arg1: memref<8x512xf32, #tpu.memory_space<vmem>>, %arg2: memref<8x512xf32, #tpu.memory_space<vmem>>, %arg3: memref<8x256xf32, #tpu.memory_space<vmem>>, %arg4: memref<8x256xf32, #tpu.memory_space<vmem>>, %arg5: memref<512x512xbf16, #tpu.memory_space<vmem>>, %arg6: memref<1x512xf32, #tpu.memory_space<vmem>>, %arg7: memref<256x512xbf16, #tpu.memory_space<vmem>>, %arg8: memref<1x512xf32, #tpu.memory_space<vmem>>, %arg9: memref<256x128xbf16, #tpu.memory_space<vmem>>, %arg10: memref<1x128xf32, #tpu.memory_space<vmem>>, %arg11: memref<8x128xf32, #tpu.memory_space<vmem>>, %arg12: memref<8x256xf32, #tpu.memory_space<vmem>>, %arg13: memref<8x256xf32, #tpu.memory_space<vmem>>) attributes {dimension_semantics = [#tpu.dimension_semantics<parallel>], iteration_bounds = array<i64: 1>, scalar_prefetch = 0 : i64, scratch_operands = 0 : i64, tpu.core_type = #tpu.core_type<tc>, window_params = [{transform_indices = @transform_0, window_bounds = array<i64: 8, 512>}, {transform_indices = @transform_1, window_bounds = array<i64: 8, 512>}, {transform_indices = @transform_2, window_bounds = array<i64: 8, 256>}, {transform_indices = @transform_3, window_bounds = array<i64: 8, 256>}, {pipeline_mode = #tpu.pipeline_mode<synchronous>, transform_indices = @transform_4, window_bounds = array<i64: 512, 512>}, {pipeline_mode = #tpu.pipeline_mode<synchronous>, transform_indices = @transform_5, window_bounds = array<i64: 1, 512>}, {pipeline_mode = #tpu.pipeline_mode<synchronous>, transform_indices = @transform_6, window_bounds = array<i64: 256, 512>}, {pipeline_mode = #tpu.pipeline_mode<synchronous>, transform_indices = @transform_7, window_bounds = array<i64: 1, 512>}, {pipeline_mode = #tpu.pipeline_mode<synchronous>, transform_indices = @transform_8, window_bounds = array<i64: 256, 128>}, {pipeline_mode = #tpu.pipeline_mode<synchronous>, transform_indices = @transform_9, window_bounds = array<i64: 1, 128>}, {transform_indices = @transform_10, window_bounds = array<i64: 8, 128>}, {transform_indices = @transform_11, window_bounds = array<i64: 8, 256>}, {transform_indices = @transform_12, window_bounds = array<i64: 8, 256>}]} {
    %c0 = arith.constant 0 : index
    %c0_0 = arith.constant 0 : index
    %0 = vector.load %arg1[%c0, %c0_0] : memref<8x512xf32, #tpu.memory_space<vmem>>, vector<8x512xf32>
    %c0_1 = arith.constant 0 : index
    %c0_2 = arith.constant 0 : index
    %1 = vector.load %arg2[%c0_1, %c0_2] : memref<8x512xf32, #tpu.memory_space<vmem>>, vector<8x512xf32>
    %2 = tpu.concatenate %0, %1 in 0 : vector<8x512xf32>, vector<8x512xf32> -> vector<16x512xf32>
    %3 = arith.truncf %2 : vector<16x512xf32> to vector<16x512xbf16>
    %c0_3 = arith.constant 0 : index
    %c0_4 = arith.constant 0 : index
    %4 = vector.load %arg5[%c0_3, %c0_4] : memref<512x512xbf16, #tpu.memory_space<vmem>>, vector<512x512xbf16>
    %cst = arith.constant dense<0.000000e+00> : vector<16x512xf32>
    %5 = tpu.matmul %3, %4, %cst {dimension_numbers = #tpu.dot_dimension_numbers<[1], [0], [0], [1], [0, 0, 1, 1], [], []>} : vector<16x512xbf16>, vector<512x512xbf16>, vector<16x512xf32> -> vector<16x512xf32>
    %c0_5 = arith.constant 0 : index
    %c0_6 = arith.constant 0 : index
    %6 = vector.load %arg6[%c0_5, %c0_6] : memref<1x512xf32, #tpu.memory_space<vmem>>, vector<1x512xf32>
    %7 = vector.broadcast %6 : vector<1x512xf32> to vector<16x512xf32>
    %8 = arith.addf %5, %7 : vector<16x512xf32>
    %cst_7 = arith.constant 0.000000e+00 : f32
    %9 = vector.broadcast %cst_7 : f32 to vector<16x512xf32>
    %10 = arith.maximumf %8, %9 : vector<16x512xf32>
    %11 = vector.extract_strided_slice %10 {offsets = [0, 0], sizes = [8, 256], strides = [1, 1]} : vector<16x512xf32> to vector<8x256xf32>
    %12 = vector.extract_strided_slice %10 {offsets = [8, 256], sizes = [8, 256], strides = [1, 1]} : vector<16x512xf32> to vector<8x256xf32>
    %c0_8 = arith.constant 0 : index
    %c0_9 = arith.constant 0 : index
    %13 = vector.load %arg12[%c0_8, %c0_9] : memref<8x256xf32, #tpu.memory_space<vmem>>, vector<8x256xf32>
    tpu.vector_store %arg12[%c0_8, %c0_9], %12 {strides = array<i32>} : memref<8x256xf32, #tpu.memory_space<vmem>>, vector<8x256xf32>,
    %c0_10 = arith.constant 0 : index
    %c0_11 = arith.constant 0 : index
    %14 = vector.load %arg3[%c0_10, %c0_11] : memref<8x256xf32, #tpu.memory_space<vmem>>, vector<8x256xf32>
    %15 = arith.mulf %14, %12 : vector<8x256xf32>
    %cst_12 = arith.constant 1.000000e+00 : f32
    %16 = vector.broadcast %cst_12 : f32 to vector<8x256xf32>
    %17 = arith.addf %16, %15 : vector<8x256xf32>
    %18 = arith.mulf %11, %17 : vector<8x256xf32>
    %19 = tpu.concatenate %18, %12 in 0 : vector<8x256xf32>, vector<8x256xf32> -> vector<16x256xf32>
    %20 = arith.truncf %19 : vector<16x256xf32> to vector<16x256xbf16>
    %c0_13 = arith.constant 0 : index
    %c0_14 = arith.constant 0 : index
    %21 = vector.load %arg7[%c0_13, %c0_14] : memref<256x512xbf16, #tpu.memory_space<vmem>>, vector<256x512xbf16>
    %cst_15 = arith.constant dense<0.000000e+00> : vector<16x512xf32>
    %22 = tpu.matmul %20, %21, %cst_15 {dimension_numbers = #tpu.dot_dimension_numbers<[1], [0], [0], [1], [0, 0, 1, 1], [], []>} : vector<16x256xbf16>, vector<256x512xbf16>, vector<16x512xf32> -> vector<16x512xf32>
    %c0_16 = arith.constant 0 : index
    %c0_17 = arith.constant 0 : index
    %23 = vector.load %arg8[%c0_16, %c0_17] : memref<1x512xf32, #tpu.memory_space<vmem>>, vector<1x512xf32>
    %24 = vector.broadcast %23 : vector<1x512xf32> to vector<16x512xf32>
    %25 = arith.addf %22, %24 : vector<16x512xf32>
    %cst_18 = arith.constant 0.000000e+00 : f32
    %26 = vector.broadcast %cst_18 : f32 to vector<16x512xf32>
    %27 = arith.maximumf %25, %26 : vector<16x512xf32>
    %28 = vector.extract_strided_slice %27 {offsets = [0, 0], sizes = [8, 256], strides = [1, 1]} : vector<16x512xf32> to vector<8x256xf32>
    %29 = vector.extract_strided_slice %27 {offsets = [8, 256], sizes = [8, 256], strides = [1, 1]} : vector<16x512xf32> to vector<8x256xf32>
    %c0_19 = arith.constant 0 : index
    %c0_20 = arith.constant 0 : index
    %30 = vector.load %arg13[%c0_19, %c0_20] : memref<8x256xf32, #tpu.memory_space<vmem>>, vector<8x256xf32>
    tpu.vector_store %arg13[%c0_19, %c0_20], %29 {strides = array<i32>} : memref<8x256xf32, #tpu.memory_space<vmem>>, vector<8x256xf32>,
    %c0_21 = arith.constant 0 : index
    %c0_22 = arith.constant 0 : index
    %31 = vector.load %arg4[%c0_21, %c0_22] : memref<8x256xf32, #tpu.memory_space<vmem>>, vector<8x256xf32>
    %32 = arith.mulf %31, %29 : vector<8x256xf32>
    %cst_23 = arith.constant 1.000000e+00 : f32
    %33 = vector.broadcast %cst_23 : f32 to vector<8x256xf32>
    %34 = arith.addf %33, %32 : vector<8x256xf32>
    %35 = arith.mulf %28, %34 : vector<8x256xf32>
    %36 = arith.truncf %35 : vector<8x256xf32> to vector<8x256xbf16>
    %c0_24 = arith.constant 0 : index
    %c0_25 = arith.constant 0 : index
    %37 = vector.load %arg9[%c0_24, %c0_25] : memref<256x128xbf16, #tpu.memory_space<vmem>>, vector<256x128xbf16>
    %cst_26 = arith.constant dense<0.000000e+00> : vector<8x128xf32>
    %38 = tpu.matmul %36, %37, %cst_26 {dimension_numbers = #tpu.dot_dimension_numbers<[1], [0], [0], [1], [0, 0, 1, 1], [], []>} : vector<8x256xbf16>, vector<256x128xbf16>, vector<8x128xf32> -> vector<8x128xf32>
    %c0_27 = arith.constant 0 : index
    %c0_28 = arith.constant 0 : index
    %39 = vector.load %arg10[%c0_27, %c0_28] : memref<1x128xf32, #tpu.memory_space<vmem>>, vector<1x128xf32>
    %40 = vector.broadcast %39 : vector<1x128xf32> to vector<8x128xf32>
    %41 = arith.addf %38, %40 : vector<8x128xf32>
    %c0_29 = arith.constant 0 : index
    %c0_30 = arith.constant 0 : index
    %42 = vector.load %arg11[%c0_29, %c0_30] : memref<8x128xf32, #tpu.memory_space<vmem>>, vector<8x128xf32>
    tpu.vector_store %arg11[%c0_29, %c0_30], %41 {strides = array<i32>} : memref<8x128xf32, #tpu.memory_space<vmem>>, vector<8x128xf32>,
    return
  }
  func.func @transform_0(%arg0: i32) -> (i32, i32) {
    %c0_i32 = arith.constant 0 : i32
    %c0_i32_0 = arith.constant 0 : i32
    return %arg0, %c0_i32 : i32, i32
  }
  func.func @transform_1(%arg0: i32) -> (i32, i32) {
    %c0_i32 = arith.constant 0 : i32
    %c0_i32_0 = arith.constant 0 : i32
    return %arg0, %c0_i32 : i32, i32
  }
  func.func @transform_2(%arg0: i32) -> (i32, i32) {
    %c0_i32 = arith.constant 0 : i32
    %c0_i32_0 = arith.constant 0 : i32
    return %arg0, %c0_i32 : i32, i32
  }
  func.func @transform_3(%arg0: i32) -> (i32, i32) {
    %c0_i32 = arith.constant 0 : i32
    %c0_i32_0 = arith.constant 0 : i32
    return %arg0, %c0_i32 : i32, i32
  }
  func.func @transform_4(%arg0: i32) -> (i32, i32) {
    %c0_i32 = arith.constant 0 : i32
    %c0_i32_0 = arith.constant 0 : i32
    %c0_i32_1 = arith.constant 0 : i32
    return %c0_i32, %c0_i32_0 : i32, i32
  }
  func.func @transform_5(%arg0: i32) -> (i32, i32) {
    %c0_i32 = arith.constant 0 : i32
    %c0_i32_0 = arith.constant 0 : i32
    %c0_i32_1 = arith.constant 0 : i32
    return %c0_i32, %c0_i32_0 : i32, i32
  }
  func.func @transform_6(%arg0: i32) -> (i32, i32) {
    %c0_i32 = arith.constant 0 : i32
    %c0_i32_0 = arith.constant 0 : i32
    %c0_i32_1 = arith.constant 0 : i32
    return %c0_i32, %c0_i32_0 : i32, i32
  }
  func.func @transform_7(%arg0: i32) -> (i32, i32) {
    %c0_i32 = arith.constant 0 : i32
    %c0_i32_0 = arith.constant 0 : i32
    %c0_i32_1 = arith.constant 0 : i32
    return %c0_i32, %c0_i32_0 : i32, i32
  }
  func.func @transform_8(%arg0: i32) -> (i32, i32) {
    %c0_i32 = arith.constant 0 : i32
    %c0_i32_0 = arith.constant 0 : i32
    %c0_i32_1 = arith.constant 0 : i32
    return %c0_i32, %c0_i32_0 : i32, i32
  }
  func.func @transform_9(%arg0: i32) -> (i32, i32) {
    %c0_i32 = arith.constant 0 : i32
    %c0_i32_0 = arith.constant 0 : i32
    %c0_i32_1 = arith.constant 0 : i32
    return %c0_i32, %c0_i32_0 : i32, i32
  }
  func.func @transform_10(%arg0: i32) -> (i32, i32) {
    %c0_i32 = arith.constant 0 : i32
    %c0_i32_0 = arith.constant 0 : i32
    return %arg0, %c0_i32 : i32, i32
  }
  func.func @transform_11(%arg0: i32) -> (i32, i32) {
    %c0_i32 = arith.constant 0 : i32
    %c0_i32_0 = arith.constant 0 : i32
    return %arg0, %c0_i32 : i32, i32
  }
  func.func @transform_12(%arg0: i32) -> (i32, i32) {
    %c0_i32 = arith.constant 0 : i32
    %c0_i32_0 = arith.constant 0 : i32
    return %arg0, %c0_i32 : i32, i32
  }
}

</mosaic_0001>

<bundles_post_ra>
// kernel: forward.3
= control target key start
LH: loop header
LB: loop body
LE: loop exit
PB: predicated region body
PF: predicated region fallthrough
CT: control target
= control target key end

     0   :  { %s3062_s0 = inlined_call_operand.vmem [shape: f32[8,512], index: 0, kind: input, shape index: {}]   ;;  %s3063_s1 = inlined_call_operand.vmem [shape: f32[8,512], index: 1, kind: input, shape index: {}]   ;;  %s3064_s2 = inlined_call_operand.vmem [shape: f32[8,256], index: 2, kind: input, shape index: {}]   ;;  %s3065_s3 = inlined_call_operand.vmem [shape: f32[8,256], index: 3, kind: input, shape index: {}]   ;;  %s3066_s4 = inlined_call_operand.vmem [shape: bf16[512,512], index: 4, kind: input, shape index: {}]   ;;  %s3067_s5 = inlined_call_operand.vmem [shape: f32[1,512], index: 5, kind: input, shape index: {}]   ;;  %s3068_s6 = inlined_call_operand.vmem [shape: bf16[256,512], index: 6, kind: input, shape index: {}]   ;;  %s3069_s7 = inlined_call_operand.vmem [shape: f32[1,512], index: 7, kind: input, shape index: {}]   ;;  %s3070_s8 = inlined_call_operand.vmem [shape: bf16[256,128], index: 8, kind: input, shape index: {}]   ;;  %s3071_s9 = inlined_call_operand.vmem [shape: f32[1,128], index: 9, kind: input, shape index: {}]   ;;  %s3072_s10 = inlined_call_operand.hbm [shape: f32[8,128], index: 10, kind: output, shape index: {0}]   ;;  %s3073_s11 = inlined_call_operand.vmem [shape: f32[8,256], index: 11, kind: output, shape index: {1}]   ;;  %s3074_s12 = inlined_call_operand.vmem [shape: f32[8,256], index: 12, kind: output, shape index: {2}]  }
   0x1   :  { %v1956_v0 = vld [vmem:[%s3066_s4 + $0xe4] ss:$16 sps:$4 sm:$0xff]   ;;  %v1960_v2 = vld [vmem:[%s3066_s4 + $0xe0] ss:$16 sps:$4 sm:$0xff]   ;;  %v41_v46 = vld [vmem:[%s3062_s0 + $0x8] sm:$0xff] }
   0x2   :  { %v1958_v1 = vld [vmem:[%s3066_s4 + $0x2e4] ss:$16 sps:$4 sm:$0xff]   ;;  %842 = vmatprep.subr.bf16.mxu0 %v1956_v0  ;;  %v1961_v3 = vld [vmem:[%s3066_s4 + $0x2e0] ss:$16 sps:$4 sm:$0xff]   ;;  %v45_v47 = vld [vmem:[%s3063_s1 + $0x8] sm:$0xff] }
   0x3   :  { %883 = vmatprep.subr.bf16.mxu1 %v1958_v1  ;;  %v1962_v4 = vld [vmem:[%s3066_s4 + $0xc4] ss:$16 sps:$4 sm:$0xff]   ;;  %843 = vmatpush1.bf16.msra.mxu0 %v1960_v2  ;;  %v1966_v6 = vld [vmem:[%s3066_s4 + $0xc0] ss:$16 sps:$4 sm:$0xff]   ;;  %v43_v48 = vld [vmem:[%s3062_s0 + $0x18] sm:$0xff]  ;;  %v49_v53 = vpack.c.bf16 %v45_v47, %v41_v46 }
   0x4   :  { %884 = vmatpush1.bf16.msra.mxu1 %v1961_v3  ;;  %v1964_v5 = vld [vmem:[%s3066_s4 + $0x2c4] ss:$16 sps:$4 sm:$0xff]   ;;  %844 = vmatprep.subr.bf16.mxu0 %v1962_v4  ;;  %v1967_v7 = vld [vmem:[%s3066_s4 + $0x2c0] ss:$16 sps:$4 sm:$0xff]   ;;  %v47_v49 = vld [vmem:[%s3063_s1 + $0x18] sm:$0xff] }
   0x5   :  { %885 = vmatprep.subr.bf16.mxu1 %v1964_v5  ;;  %v1968_v8 = vld [vmem:[%s3066_s4 + $0xa4] ss:$16 sps:$4 sm:$0xff]   ;;  %v1972_v10 = vld [vmem:[%s3066_s4 + $0xa0] ss:$16 sps:$4 sm:$0xff]   ;;  %v51_v54 = vpack.c.bf16 %v47_v49, %v43_v48  ;;  %874 = vmatprep.mubr.bf16.mxu0 %v49_v53  ;;  %v2100_v46 = vld [vmem:[%s3066_s4 + $0x1e8] ss:$16 sps:$4 sm:$0xff]  }
   0x6   :  { %v1970_v9 = vld [vmem:[%s3066_s4 + $0x2a4] ss:$16 sps:$4 sm:$0xff]   ;;  %v1973_v11 = vld [vmem:[%s3066_s4 + $0x2a0] ss:$16 sps:$4 sm:$0xff]   ;;  %v2103_v47 = vld [vmem:[%s3066_s4 + $0x3e8] ss:$16 sps:$4 sm:$0xff]  }
   0x7   :  { %845 = vmatpush1.bf16.msra.mxu0 %v1966_v6  ;;  %v1974_v12 = vld [vmem:[%s3066_s4 + $0x84] ss:$16 sps:$4 sm:$0xff]   ;;  %v1978_v14 = vld [vmem:[%s3066_s4 + $0x80] ss:$16 sps:$4 sm:$0xff]   ;;  %915 = vmatprep.mubr.bf16.mxu1 %v51_v54  ;;  %v2108_v48 = vld [vmem:[%s3066_s4 + $0x1cc] ss:$16 sps:$4 sm:$0xff]  }
   0x8   :  { %886 = vmatpush1.bf16.msra.mxu1 %v1967_v7  ;;  %846 = vmatprep.subr.bf16.mxu0 %v1968_v8  ;;  %v1976_v13 = vld [vmem:[%s3066_s4 + $0x284] ss:$16 sps:$4 sm:$0xff]   ;;  %v1979_v15 = vld [vmem:[%s3066_s4 + $0x280] ss:$16 sps:$4 sm:$0xff]   ;;  %v2111_v49 = vld [vmem:[%s3066_s4 + $0x3cc] ss:$16 sps:$4 sm:$0xff]  }
   0x9   :  { %887 = vmatprep.subr.bf16.mxu1 %v1970_v9  ;;  %v1980_v16 = vld [vmem:[%s3066_s4 + $0x64] ss:$16 sps:$4 sm:$0xff]   ;;  %v1984_v18 = vld [vmem:[%s3066_s4 + $0x60] ss:$16 sps:$4 sm:$0xff]  }
   0xa   :  { %v1982_v17 = vld [vmem:[%s3066_s4 + $0x264] ss:$16 sps:$4 sm:$0xff]   ;;  %v1985_v19 = vld [vmem:[%s3066_s4 + $0x260] ss:$16 sps:$4 sm:$0xff]  }
   0xb   :  { %847 = vmatpush1.bf16.msra.mxu0 %v1972_v10  ;;  %v1986_v20 = vld [vmem:[%s3066_s4 + $0x44] ss:$16 sps:$4 sm:$0xff]   ;;  %v1990_v22 = vld [vmem:[%s3066_s4 + $0x40] ss:$16 sps:$4 sm:$0xff]   ;;  %v2054_v10 = vld [vmem:[%s3066_s4 + $0xec] ss:$16 sps:$4 sm:$0xff]  }
   0xc   :  { %888 = vmatpush1.bf16.msra.mxu1 %v1973_v11  ;;  %848 = vmatprep.subr.bf16.mxu0 %v1974_v12  ;;  %v1988_v21 = vld [vmem:[%s3066_s4 + $0x244] ss:$16 sps:$4 sm:$0xff]   ;;  %v1991_v23 = vld [vmem:[%s3066_s4 + $0x240] ss:$16 sps:$4 sm:$0xff]   ;;  %v2057_v11 = vld [vmem:[%s3066_s4 + $0x2ec] ss:$16 sps:$4 sm:$0xff]  }
   0xd   :  { %889 = vmatprep.subr.bf16.mxu1 %v1976_v13  ;;  %v1992_v24 = vld [vmem:[%s3066_s4 + $0x24] ss:$16 sps:$4 sm:$0xff]   ;;  %v1996_v26 = vld [vmem:[%s3066_s4 + $0x20] ss:$16 sps:$4 sm:$0xff]  }
   0xe   :  { %v1994_v25 = vld [vmem:[%s3066_s4 + $0x224] ss:$16 sps:$4 sm:$0xff]   ;;  %v1997_v27 = vld [vmem:[%s3066_s4 + $0x220] ss:$16 sps:$4 sm:$0xff]  }
   0xf   :  { %849 = vmatpush1.bf16.msra.mxu0 %v1978_v14  ;;  %v1998_v28 = vld [vmem:[%s3066_s4 + $0x4] ss:$16 sps:$4 sm:$0xff]   ;;  %v2002_v30 = vld [vmem:[%s3066_s4] ss:$16 sps:$4 sm:$0xff]   ;;  %v2052_v14 = vld [vmem:[%s3066_s4 + $0xe8] ss:$16 sps:$4 sm:$0xff]  }
  0x10   :  { %890 = vmatpush1.bf16.msra.mxu1 %v1979_v15  ;;  %850 = vmatprep.subr.bf16.mxu0 %v1980_v16  ;;  %v2000_v29 = vld [vmem:[%s3066_s4 + $0x204] ss:$16 sps:$4 sm:$0xff]   ;;  %v2003_v31 = vld [vmem:[%s3066_s4 + $0x200] ss:$16 sps:$4 sm:$0xff]   ;;  %v2055_v15 = vld [vmem:[%s3066_s4 + $0x2e8] ss:$16 sps:$4 sm:$0xff]  }
  0x11   :  { %891 = vmatprep.subr.bf16.mxu1 %v1982_v17  ;;  %v2004_v32 = vld [vmem:[%s3066_s4 + $0x1e4] ss:$16 sps:$4 sm:$0xff]   ;;  %v2008_v34 = vld [vmem:[%s3066_s4 + $0x1e0] ss:$16 sps:$4 sm:$0xff]   ;;  %v2060_v16 = vld [vmem:[%s3066_s4 + $0xcc] ss:$16 sps:$4 sm:$0xff]  }
  0x12   :  { %v2006_v33 = vld [vmem:[%s3066_s4 + $0x3e4] ss:$16 sps:$4 sm:$0xff]   ;;  %v2009_v35 = vld [vmem:[%s3066_s4 + $0x3e0] ss:$16 sps:$4 sm:$0xff]   ;;  %v2063_v17 = vld [vmem:[%s3066_s4 + $0x2cc] ss:$16 sps:$4 sm:$0xff]  }
  0x13   :  { %851 = vmatpush1.bf16.msra.mxu0 %v1984_v18  ;;  %v2010_v36 = vld [vmem:[%s3066_s4 + $0x1c4] ss:$16 sps:$4 sm:$0xff]   ;;  %v2014_v38 = vld [vmem:[%s3066_s4 + $0x1c0] ss:$16 sps:$4 sm:$0xff]   ;;  %v2058_v18 = vld [vmem:[%s3066_s4 + $0xc8] ss:$16 sps:$4 sm:$0xff]  }
  0x14   :  { %892 = vmatpush1.bf16.msra.mxu1 %v1985_v19  ;;  %852 = vmatprep.subr.bf16.mxu0 %v1986_v20  ;;  %v2012_v37 = vld [vmem:[%s3066_s4 + $0x3c4] ss:$16 sps:$4 sm:$0xff]   ;;  %v2015_v39 = vld [vmem:[%s3066_s4 + $0x3c0] ss:$16 sps:$4 sm:$0xff]   ;;  %v2061_v19 = vld [vmem:[%s3066_s4 + $0x2c8] ss:$16 sps:$4 sm:$0xff]  }
  0x15   :  { %893 = vmatprep.subr.bf16.mxu1 %v1988_v21  ;;  %v2016_v40 = vld [vmem:[%s3066_s4 + $0x1a4] ss:$16 sps:$4 sm:$0xff]   ;;  %v2020_v42 = vld [vmem:[%s3066_s4 + $0x1a0] ss:$16 sps:$4 sm:$0xff]   ;;  %v2066_v20 = vld [vmem:[%s3066_s4 + $0xac] ss:$16 sps:$4 sm:$0xff]  }
  0x16   :  { %v2018_v41 = vld [vmem:[%s3066_s4 + $0x3a4] ss:$16 sps:$4 sm:$0xff]   ;;  %v2021_v43 = vld [vmem:[%s3066_s4 + $0x3a0] ss:$16 sps:$4 sm:$0xff]   ;;  %v2069_v21 = vld [vmem:[%s3066_s4 + $0x2ac] ss:$16 sps:$4 sm:$0xff]  }
  0x17   :  { %853 = vmatpush1.bf16.msra.mxu0 %v1990_v22  ;;  %v2022_v44 = vld [vmem:[%s3066_s4 + $0x184] ss:$16 sps:$4 sm:$0xff]   ;;  %v2026_v50 = vld [vmem:[%s3066_s4 + $0x180] ss:$16 sps:$4 sm:$0xff]   ;;  %v2064_v22 = vld [vmem:[%s3066_s4 + $0xa8] ss:$16 sps:$4 sm:$0xff]  }
  0x18   :  { %894 = vmatpush1.bf16.msra.mxu1 %v1991_v23  ;;  %854 = vmatprep.subr.bf16.mxu0 %v1992_v24  ;;  %v2024_v45 = vld [vmem:[%s3066_s4 + $0x384] ss:$16 sps:$4 sm:$0xff]   ;;  %v2027_v51 = vld [vmem:[%s3066_s4 + $0x380] ss:$16 sps:$4 sm:$0xff]   ;;  %v2067_v23 = vld [vmem:[%s3066_s4 + $0x2a8] ss:$16 sps:$4 sm:$0xff]  }
  0x19   :  { %895 = vmatprep.subr.bf16.mxu1 %v1994_v25  ;;  %v2028_v52 = vld [vmem:[%s3066_s4 + $0x164] ss:$16 sps:$4 sm:$0xff]   ;;  %v2032_v56 = vld [vmem:[%s3066_s4 + $0x160] ss:$16 sps:$4 sm:$0xff]   ;;  %v2072_v24 = vld [vmem:[%s3066_s4 + $0x8c] ss:$16 sps:$4 sm:$0xff]  }
  0x1a   :  { %v2030_v55 = vld [vmem:[%s3066_s4 + $0x364] ss:$16 sps:$4 sm:$0xff]   ;;  %v2033_v57 = vld [vmem:[%s3066_s4 + $0x360] ss:$16 sps:$4 sm:$0xff]   ;;  %v2075_v25 = vld [vmem:[%s3066_s4 + $0x28c] ss:$16 sps:$4 sm:$0xff]  }
  0x1b   :  { %855 = vmatpush1.bf16.msra.mxu0 %v1996_v26  ;;  %v2034_v58 = vld [vmem:[%s3066_s4 + $0x144] ss:$16 sps:$4 sm:$0xff]   ;;  %v2038_v60 = vld [vmem:[%s3066_s4 + $0x140] ss:$16 sps:$4 sm:$0xff]   ;;  %v2070_v26 = vld [vmem:[%s3066_s4 + $0x88] ss:$16 sps:$4 sm:$0xff]  }
  0x1c   :  { %896 = vmatpush1.bf16.msra.mxu1 %v1997_v27  ;;  %856 = vmatprep.subr.bf16.mxu0 %v1998_v28  ;;  %v2036_v59 = vld [vmem:[%s3066_s4 + $0x344] ss:$16 sps:$4 sm:$0xff]   ;;  %v2039_v61 = vld [vmem:[%s3066_s4 + $0x340] ss:$16 sps:$4 sm:$0xff]   ;;  %v2073_v27 = vld [vmem:[%s3066_s4 + $0x288] ss:$16 sps:$4 sm:$0xff]  }
  0x1d   :  { %897 = vmatprep.subr.bf16.mxu1 %v2000_v29  ;;  %v2040_v62 = vld [vmem:[%s3066_s4 + $0x124] ss:$16 sps:$4 sm:$0xff]   ;;  %v2044_v0 = vld [vmem:[%s3066_s4 + $0x120] ss:$16 sps:$4 sm:$0xff]   ;;  %v2078_v28 = vld [vmem:[%s3066_s4 + $0x6c] ss:$16 sps:$4 sm:$0xff]  }
  0x1e   :  { %v2042_v63 = vld [vmem:[%s3066_s4 + $0x324] ss:$16 sps:$4 sm:$0xff]   ;;  %v2045_v1 = vld [vmem:[%s3066_s4 + $0x320] ss:$16 sps:$4 sm:$0xff]   ;;  %v2081_v29 = vld [vmem:[%s3066_s4 + $0x26c] ss:$16 sps:$4 sm:$0xff]  }
  0x1f   :  { %857 = vmatpush1.bf16.msra.mxu0 %v2002_v30  ;;  %v2046_v2 = vld [vmem:[%s3066_s4 + $0x104] ss:$16 sps:$4 sm:$0xff]   ;;  %v2050_v4 = vld [vmem:[%s3066_s4 + $0x100] ss:$16 sps:$4 sm:$0xff]   ;;  %v2076_v30 = vld [vmem:[%s3066_s4 + $0x68] ss:$16 sps:$4 sm:$0xff]  }
  0x20   :  { %898 = vmatpush1.bf16.msra.mxu1 %v2003_v31  ;;  %858 = vmatprep.subr.bf16.mxu0 %v2004_v32  ;;  %v2048_v3 = vld [vmem:[%s3066_s4 + $0x304] ss:$16 sps:$4 sm:$0xff]   ;;  %v2051_v5 = vld [vmem:[%s3066_s4 + $0x300] ss:$16 sps:$4 sm:$0xff]   ;;  %v2079_v31 = vld [vmem:[%s3066_s4 + $0x268] ss:$16 sps:$4 sm:$0xff]  }
  0x21   :  { %899 = vmatprep.subr.bf16.mxu1 %v2006_v33  ;;  %v40_v6 = vld [vmem:[%s3062_s0] sm:$0xff]  ;;  %v42_v8 = vld [vmem:[%s3062_s0 + $0x10] sm:$0xff]  ;;  %v2084_v32 = vld [vmem:[%s3066_s4 + $0x4c] ss:$16 sps:$4 sm:$0xff]  }
  0x22   :  { %v44_v7 = vld [vmem:[%s3063_s1] sm:$0xff]  ;;  %v46_v9 = vld [vmem:[%s3063_s1 + $0x10] sm:$0xff]  ;;  %v2087_v33 = vld [vmem:[%s3066_s4 + $0x24c] ss:$16 sps:$4 sm:$0xff]  }
  0x23   :  { %859 = vmatpush2.bf16.msra.mxu0 %v2008_v34  ;;  %v2570_v12 = vpack.c.bf16 %v44_v7, %v40_v6  ;;  %v2572_v13 = vpack.c.bf16 %v46_v9, %v42_v8  ;;  %v2082_v34 = vld [vmem:[%s3066_s4 + $0x48] ss:$16 sps:$4 sm:$0xff]  }
  0x24   :  { %900 = vmatpush2.bf16.msra.mxu1 %v2009_v35  ;;  %860 = vmatprep.subr.bf16.mxu0 %v2010_v36  ;;  %v2085_v35 = vld [vmem:[%s3066_s4 + $0x248] ss:$16 sps:$4 sm:$0xff]   ;;  %v2090_v36 = vld [vmem:[%s3066_s4 + $0x2c] ss:$16 sps:$4 sm:$0xff]  }
  0x25   :  { %901 = vmatprep.subr.bf16.mxu1 %v2012_v37  ;;  %v2093_v37 = vld [vmem:[%s3066_s4 + $0x22c] ss:$16 sps:$4 sm:$0xff]   ;;  %v2136_v6 = vld [vmem:[%s3066_s4 + $0x128] ss:$16 sps:$4 sm:$0xff]  }
  0x26   :  { %v2139_v7 = vld [vmem:[%s3066_s4 + $0x328] ss:$16 sps:$4 sm:$0xff]  }
  0x27   :  { %861 = vmatpush2.bf16.msra.mxu0 %v2014_v38  ;;  %v2088_v38 = vld [vmem:[%s3066_s4 + $0x28] ss:$16 sps:$4 sm:$0xff]  }
  0x28   :  { %902 = vmatpush2.bf16.msra.mxu1 %v2015_v39  ;;  %862 = vmatprep.subr.bf16.mxu0 %v2016_v40  ;;  %v2091_v39 = vld [vmem:[%s3066_s4 + $0x228] ss:$16 sps:$4 sm:$0xff]   ;;  %v2096_v40 = vld [vmem:[%s3066_s4 + $0xc] ss:$16 sps:$4 sm:$0xff]  }
  0x29   :  { %903 = vmatprep.subr.bf16.mxu1 %v2018_v41  ;;  %v2099_v41 = vld [vmem:[%s3066_s4 + $0x20c] ss:$16 sps:$4 sm:$0xff]  }
  0x2b   :  { %863 = vmatpush2.bf16.msra.mxu0 %v2020_v42  ;;  %v2094_v42 = vld [vmem:[%s3066_s4 + $0x8] ss:$16 sps:$4 sm:$0xff]  }
  0x2c   :  { %904 = vmatpush2.bf16.msra.mxu1 %v2021_v43  ;;  %864 = vmatprep.subr.bf16.mxu0 %v2022_v44  ;;  %v2097_v43 = vld [vmem:[%s3066_s4 + $0x208] ss:$16 sps:$4 sm:$0xff]   ;;  %v2102_v44 = vld [vmem:[%s3066_s4 + $0x1ec] ss:$16 sps:$4 sm:$0xff]  }
  0x2d   :  { %905 = vmatprep.subr.bf16.mxu1 %v2024_v45  ;;  %v2105_v45 = vld [vmem:[%s3066_s4 + $0x3ec] ss:$16 sps:$4 sm:$0xff]  }
  0x2f   :  { %865 = vmatpush2.bf16.msra.mxu0 %v2026_v50  ;;  %v2106_v50 = vld [vmem:[%s3066_s4 + $0x1c8] ss:$16 sps:$4 sm:$0xff]  }
  0x30   :  { %906 = vmatpush2.bf16.msra.mxu1 %v2027_v51  ;;  %866 = vmatprep.subr.bf16.mxu0 %v2028_v52  ;;  %v2109_v51 = vld [vmem:[%s3066_s4 + $0x3c8] ss:$16 sps:$4 sm:$0xff]   ;;  %v2114_v52 = vld [vmem:[%s3066_s4 + $0x1ac] ss:$16 sps:$4 sm:$0xff]  }
  0x31   :  { %907 = vmatprep.subr.bf16.mxu1 %v2030_v55  ;;  %v2115_v55 = vld [vmem:[%s3066_s4 + $0x3a8] ss:$16 sps:$4 sm:$0xff]  }
  0x33   :  { %867 = vmatpush2.bf16.msra.mxu0 %v2032_v56  ;;  %v2120_v56 = vld [vmem:[%s3066_s4 + $0x18c] ss:$16 sps:$4 sm:$0xff]  }
  0x34   :  { %908 = vmatpush2.bf16.msra.mxu1 %v2033_v57  ;;  %868 = vmatprep.subr.bf16.mxu0 %v2034_v58  ;;  %v2123_v57 = vld [vmem:[%s3066_s4 + $0x38c] ss:$16 sps:$4 sm:$0xff]   ;;  %v2118_v58 = vld [vmem:[%s3066_s4 + $0x188] ss:$16 sps:$4 sm:$0xff]  }
  0x35   :  { %909 = vmatprep.subr.bf16.mxu1 %v2036_v59  ;;  %v2121_v59 = vld [vmem:[%s3066_s4 + $0x388] ss:$16 sps:$4 sm:$0xff]  }
  0x37   :  { %869 = vmatpush2.bf16.msra.mxu0 %v2038_v60  ;;  %v2126_v60 = vld [vmem:[%s3066_s4 + $0x16c] ss:$16 sps:$4 sm:$0xff]  }
  0x38   :  { %910 = vmatpush2.bf16.msra.mxu1 %v2039_v61  ;;  %870 = vmatprep.subr.bf16.mxu0 %v2040_v62  ;;  %v2129_v61 = vld [vmem:[%s3066_s4 + $0x36c] ss:$16 sps:$4 sm:$0xff]   ;;  %v2124_v62 = vld [vmem:[%s3066_s4 + $0x168] ss:$16 sps:$4 sm:$0xff]  }
  0x39   :  { %911 = vmatprep.subr.bf16.mxu1 %v2042_v63  ;;  %v2127_v63 = vld [vmem:[%s3066_s4 + $0x368] ss:$16 sps:$4 sm:$0xff]  }
  0x3b   :  { %871 = vmatpush2.bf16.msra.mxu0 %v2044_v0  ;;  %v2132_v0 = vld [vmem:[%s3066_s4 + $0x14c] ss:$16 sps:$4 sm:$0xff]  }
  0x3c   :  { %912 = vmatpush2.bf16.msra.mxu1 %v2045_v1  ;;  %872 = vmatprep.subr.bf16.mxu0 %v2046_v2  ;;  %v2135_v1 = vld [vmem:[%s3066_s4 + $0x34c] ss:$16 sps:$4 sm:$0xff]   ;;  %v2130_v2 = vld [vmem:[%s3066_s4 + $0x148] ss:$16 sps:$4 sm:$0xff]  }
  0x3d   :  { %913 = vmatprep.subr.bf16.mxu1 %v2048_v3  ;;  %v2133_v3 = vld [vmem:[%s3066_s4 + $0x348] ss:$16 sps:$4 sm:$0xff]  }
  0x3f   :  { %873 = vmatpush2.bf16.msra.mxu0 %v2050_v4  ;;  %v2138_v4 = vld [vmem:[%s3066_s4 + $0x12c] ss:$16 sps:$4 sm:$0xff]  }
  0x40   :  { %914 = vmatpush2.bf16.msra.mxu1 %v2051_v5  ;;  %924 = vmatprep.subr.bf16.mxu0 %v2054_v10  ;;  %v2141_v5 = vld [vmem:[%s3066_s4 + $0x32c] ss:$16 sps:$4 sm:$0xff]  }
  0x41   :  { %965 = vmatprep.subr.bf16.mxu1 %v2057_v11 }
  0x42   :  { %875 = vmatmul.mubr.bf16.vlgmr.msra.gmra.mxu0 %v2570_v12 }
  0x43   :  { %916 = vmatmul.mubr.bf16.vlgmr.msra.gmra.mxu1 %v2572_v13  ;;  %925 = vmatpush1.bf16.msra.mxu0 %v2052_v14 }
  0x44   :  { %966 = vmatpush1.bf16.msra.mxu1 %v2055_v15  ;;  %926 = vmatprep.subr.bf16.mxu0 %v2060_v16 }
  0x45   :  { %967 = vmatprep.subr.bf16.mxu1 %v2063_v17  ;;  %956 = vmatprep.mubr.bf16.mxu0 %v49_v53  ;;  %v2117_v53 = vld [vmem:[%s3066_s4 + $0x3ac] ss:$16 sps:$4 sm:$0xff]  }
  0x46   :  { %997 = vmatprep.mubr.bf16.mxu1 %v51_v54  ;;  %v2112_v54 = vld [vmem:[%s3066_s4 + $0x1a8] ss:$16 sps:$4 sm:$0xff]  }
  0x47   :  { %927 = vmatpush1.bf16.msra.mxu0 %v2058_v18 }
  0x48   :  { %968 = vmatpush1.bf16.msra.mxu1 %v2061_v19  ;;  %928 = vmatprep.subr.bf16.mxu0 %v2066_v20 }
  0x49   :  { %969 = vmatprep.subr.bf16.mxu1 %v2069_v21 }
  0x4b   :  { %929 = vmatpush1.bf16.msra.mxu0 %v2064_v22 }
  0x4c   :  { %970 = vmatpush1.bf16.msra.mxu1 %v2067_v23  ;;  %930 = vmatprep.subr.bf16.mxu0 %v2072_v24 }
  0x4d   :  { %971 = vmatprep.subr.bf16.mxu1 %v2075_v25 }
  0x4f   :  { %931 = vmatpush1.bf16.msra.mxu0 %v2070_v26 }
  0x50   :  { %972 = vmatpush1.bf16.msra.mxu1 %v2073_v27  ;;  %932 = vmatprep.subr.bf16.mxu0 %v2078_v28 }
  0x51   :  { %973 = vmatprep.subr.bf16.mxu1 %v2081_v29 }
  0x53   :  { %933 = vmatpush1.bf16.msra.mxu0 %v2076_v30 }
  0x54   :  { %974 = vmatpush1.bf16.msra.mxu1 %v2079_v31  ;;  %934 = vmatprep.subr.bf16.mxu0 %v2084_v32 }
  0x55   :  { %975 = vmatprep.subr.bf16.mxu1 %v2087_v33 }
  0x57   :  { %935 = vmatpush1.bf16.msra.mxu0 %v2082_v34 }
  0x58   :  { %976 = vmatpush1.bf16.msra.mxu1 %v2085_v35  ;;  %936 = vmatprep.subr.bf16.mxu0 %v2090_v36 }
  0x59   :  { %977 = vmatprep.subr.bf16.mxu1 %v2093_v37 }
  0x5b   :  { %937 = vmatpush1.bf16.msra.mxu0 %v2088_v38 }
  0x5c   :  { %978 = vmatpush1.bf16.msra.mxu1 %v2091_v39  ;;  %938 = vmatprep.subr.bf16.mxu0 %v2096_v40 }
  0x5d   :  { %979 = vmatprep.subr.bf16.mxu1 %v2099_v41 }
  0x5f   :  { %939 = vmatpush1.bf16.msra.mxu0 %v2094_v42 }
  0x60   :  { %980 = vmatpush1.bf16.msra.mxu1 %v2097_v43  ;;  %940 = vmatprep.subr.bf16.mxu0 %v2102_v44 }
  0x61   :  { %981 = vmatprep.subr.bf16.mxu1 %v2105_v45 }
  0x63   :  { %941 = vmatpush2.bf16.msra.mxu0 %v2100_v46 }
  0x64   :  { %982 = vmatpush2.bf16.msra.mxu1 %v2103_v47  ;;  %942 = vmatprep.subr.bf16.mxu0 %v2108_v48 }
  0x65   :  { %983 = vmatprep.subr.bf16.mxu1 %v2111_v49 }
  0x67   :  { %943 = vmatpush2.bf16.msra.mxu0 %v2106_v50 }
  0x68   :  { %984 = vmatpush2.bf16.msra.mxu1 %v2109_v51  ;;  %944 = vmatprep.subr.bf16.mxu0 %v2114_v52 }
  0x69   :  { %985 = vmatprep.subr.bf16.mxu1 %v2117_v53 }
  0x6b   :  { %945 = vmatpush2.bf16.msra.mxu0 %v2112_v54 }
  0x6c   :  { %986 = vmatpush2.bf16.msra.mxu1 %v2115_v55  ;;  %946 = vmatprep.subr.bf16.mxu0 %v2120_v56 }
  0x6d   :  { %987 = vmatprep.subr.bf16.mxu1 %v2123_v57 }
  0x6f   :  { %947 = vmatpush2.bf16.msra.mxu0 %v2118_v58 }
  0x70   :  { %988 = vmatpush2.bf16.msra.mxu1 %v2121_v59  ;;  %948 = vmatprep.subr.bf16.mxu0 %v2126_v60 }
  0x71   :  { %989 = vmatprep.subr.bf16.mxu1 %v2129_v61 }
  0x73   :  { %949 = vmatpush2.bf16.msra.mxu0 %v2124_v62 }
  0x74   :  { %990 = vmatpush2.bf16.msra.mxu1 %v2127_v63  ;;  %950 = vmatprep.subr.bf16.mxu0 %v2132_v0 }
  0x75   :  { %991 = vmatprep.subr.bf16.mxu1 %v2135_v1 }
  0x77   :  { %951 = vmatpush2.bf16.msra.mxu0 %v2130_v2 }
  0x78   :  { %992 = vmatpush2.bf16.msra.mxu1 %v2133_v3 }
  0x79   :  { %18 = vsyncpa [#allocation3], 0  ;;  %952 = vmatprep.subr.bf16.mxu0 %v2138_v4  ;;  %993 = vmatprep.subr.bf16.mxu1 %v2141_v5  ;;  %v2144_v8 = vld [vmem:[%s3066_s4 + $0x10c] ss:$16 sps:$4 sm:$0xff]   ;;  %v2142_v10 = vld [vmem:[%s3066_s4 + $0x108] ss:$16 sps:$4 sm:$0xff]  }
  0x7a   :  { %v2147_v9 = vld [vmem:[%s3066_s4 + $0x30c] ss:$16 sps:$4 sm:$0xff]   ;;  %v2145_v11 = vld [vmem:[%s3066_s4 + $0x308] ss:$16 sps:$4 sm:$0xff]   ;;  %v2148_v14 = vld [vmem:[%s3068_s6 + $0xe0] ss:$16 sps:$4 sm:$0xff]  }
  0x7b   :  { %953 = vmatpush2.bf16.msra.mxu0 %v2136_v6  ;;  %v2150_v15 = vld [vmem:[%s3068_s6 + $0xe4] ss:$16 sps:$4 sm:$0xff]   ;;  %v2151_v16 = vld [vmem:[%s3068_s6 + $0xe8] ss:$16 sps:$4 sm:$0xff]   ;;  %v2153_v17 = vld [vmem:[%s3068_s6 + $0xec] ss:$16 sps:$4 sm:$0xff]  }
  0x7c   :  { %994 = vmatpush2.bf16.msra.mxu1 %v2139_v7  ;;  %954 = vmatprep.subr.bf16.mxu0 %v2144_v8  ;;  %v2154_v18 = vld [vmem:[%s3068_s6 + $0xc0] ss:$16 sps:$4 sm:$0xff]   ;;  %v2157_v19 = vld [vmem:[%s3068_s6 + $0xc8] ss:$16 sps:$4 sm:$0xff]   ;;  %v2162_v20 = vld [vmem:[%s3068_s6 + $0xa4] ss:$16 sps:$4 sm:$0xff]  }
  0x7d   :  { %995 = vmatprep.subr.bf16.mxu1 %v2147_v9  ;;  %v2165_v21 = vld [vmem:[%s3068_s6 + $0xac] ss:$16 sps:$4 sm:$0xff]   ;;  %v2160_v22 = vld [vmem:[%s3068_s6 + $0xa0] ss:$16 sps:$4 sm:$0xff]   ;;  %v2163_v23 = vld [vmem:[%s3068_s6 + $0xa8] ss:$16 sps:$4 sm:$0xff]  }
  0x7e   :  { %v2168_v24 = vld [vmem:[%s3068_s6 + $0x84] ss:$16 sps:$4 sm:$0xff]   ;;  %v2171_v25 = vld [vmem:[%s3068_s6 + $0x8c] ss:$16 sps:$4 sm:$0xff]   ;;  %v2166_v26 = vld [vmem:[%s3068_s6 + $0x80] ss:$16 sps:$4 sm:$0xff]  }
  0x7f   :  { %955 = vmatpush2.bf16.msra.mxu0 %v2142_v10  ;;  %v2169_v27 = vld [vmem:[%s3068_s6 + $0x88] ss:$16 sps:$4 sm:$0xff]   ;;  %v2174_v28 = vld [vmem:[%s3068_s6 + $0x64] ss:$16 sps:$4 sm:$0xff]   ;;  %v2177_v29 = vld [vmem:[%s3068_s6 + $0x6c] ss:$16 sps:$4 sm:$0xff]  }
  0x80   :  { %996 = vmatpush2.bf16.msra.mxu1 %v2145_v11  ;;  %1428 = vmatprep.subr.bf16.mxu0 %v2150_v15  ;;  %v2172_v30 = vld [vmem:[%s3068_s6 + $0x60] ss:$16 sps:$4 sm:$0xff]   ;;  %v2175_v31 = vld [vmem:[%s3068_s6 + $0x68] ss:$16 sps:$4 sm:$0xff]   ;;  %v2180_v32 = vld [vmem:[%s3068_s6 + $0x44] ss:$16 sps:$4 sm:$0xff]   ;;  %v182_v15 = vlaneseq }
  0x81   :  { %1469 = vmatprep.subr.bf16.mxu1 %v2153_v17  ;;  %v2183_v33 = vld [vmem:[%s3068_s6 + $0x4c] ss:$16 sps:$4 sm:$0xff]   ;;  %v2178_v34 = vld [vmem:[%s3068_s6 + $0x40] ss:$16 sps:$4 sm:$0xff]   ;;  %v2181_v35 = vld [vmem:[%s3068_s6 + $0x48] ss:$16 sps:$4 sm:$0xff]  }
  0x82   :  { %957 = vmatmul.mubr.bf16.vlgmr.msra.gmra.mxu0 %v2570_v12  ;;  %v2156_v12 = vld [vmem:[%s3068_s6 + $0xc4] ss:$16 sps:$4 sm:$0xff]   ;;  %v2189_v37 = vld [vmem:[%s3068_s6 + $0x2c] ss:$16 sps:$4 sm:$0xff]   ;;  %v2184_v38 = vld [vmem:[%s3068_s6 + $0x20] ss:$16 sps:$4 sm:$0xff]  }
  0x83   :  { %998 = vmatmul.mubr.bf16.vlgmr.msra.gmra.mxu1 %v2572_v13  ;;  %v2159_v13 = vld [vmem:[%s3068_s6 + $0xcc] ss:$16 sps:$4 sm:$0xff]   ;;  %1429 = vmatpush1.bf16.msra.mxu0 %v2148_v14  ;;  %v2186_v36 = vld [vmem:[%s3068_s6 + $0x24] ss:$16 sps:$4 sm:$0xff]   ;;  %v2187_v39 = vld [vmem:[%s3068_s6 + $0x28] ss:$16 sps:$4 sm:$0xff]  }
  0x84   :  { %1470 = vmatpush1.bf16.msra.mxu1 %v2151_v16  ;;  %1430 = vmatprep.subr.bf16.mxu0 %v2156_v12  ;;  %v2192_v40 = vld [vmem:[%s3068_s6 + $0x4] ss:$16 sps:$4 sm:$0xff]   ;;  %v2195_v41 = vld [vmem:[%s3068_s6 + $0xc] ss:$16 sps:$4 sm:$0xff]   ;;  %v2190_v42 = vld [vmem:[%s3068_s6] ss:$16 sps:$4 sm:$0xff]  }
  0x85   :  { %1471 = vmatprep.subr.bf16.mxu1 %v2159_v13  ;;  %v2193_v43 = vld [vmem:[%s3068_s6 + $0x8] ss:$16 sps:$4 sm:$0xff]   ;;  %v2198_v44 = vld [vmem:[%s3068_s6 + $0x1e4] ss:$16 sps:$4 sm:$0xff]   ;;  %v2201_v45 = vld [vmem:[%s3068_s6 + $0x1ec] ss:$16 sps:$4 sm:$0xff]  }
  0x86   :  { %v2196_v46 = vld [vmem:[%s3068_s6 + $0x1e0] ss:$16 sps:$4 sm:$0xff]   ;;  %v2199_v47 = vld [vmem:[%s3068_s6 + $0x1e8] ss:$16 sps:$4 sm:$0xff]   ;;  %v2204_v48 = vld [vmem:[%s3068_s6 + $0x1c4] ss:$16 sps:$4 sm:$0xff]  }
  0x87   :  { %1431 = vmatpush1.bf16.msra.mxu0 %v2154_v18  ;;  %v2207_v49 = vld [vmem:[%s3068_s6 + $0x1cc] ss:$16 sps:$4 sm:$0xff]   ;;  %v2202_v50 = vld [vmem:[%s3068_s6 + $0x1c0] ss:$16 sps:$4 sm:$0xff]   ;;  %v2205_v51 = vld [vmem:[%s3068_s6 + $0x1c8] ss:$16 sps:$4 sm:$0xff]  }
  0x88   :  { %1472 = vmatpush1.bf16.msra.mxu1 %v2157_v19  ;;  %1432 = vmatprep.subr.bf16.mxu0 %v2162_v20  ;;  %v2210_v52 = vld [vmem:[%s3068_s6 + $0x1a4] ss:$16 sps:$4 sm:$0xff]   ;;  %v2213_v53 = vld [vmem:[%s3068_s6 + $0x1ac] ss:$16 sps:$4 sm:$0xff]   ;;  %v2208_v54 = vld [vmem:[%s3068_s6 + $0x1a0] ss:$16 sps:$4 sm:$0xff]  }
  0x89   :  { %1473 = vmatprep.subr.bf16.mxu1 %v2165_v21  ;;  %v2211_v55 = vld [vmem:[%s3068_s6 + $0x1a8] ss:$16 sps:$4 sm:$0xff]   ;;  %v2216_v56 = vld [vmem:[%s3068_s6 + $0x184] ss:$16 sps:$4 sm:$0xff]   ;;  %v2219_v57 = vld [vmem:[%s3068_s6 + $0x18c] ss:$16 sps:$4 sm:$0xff]  }
  0x8a   :  { %v2214_v58 = vld [vmem:[%s3068_s6 + $0x180] ss:$16 sps:$4 sm:$0xff]   ;;  %v2217_v59 = vld [vmem:[%s3068_s6 + $0x188] ss:$16 sps:$4 sm:$0xff]   ;;  %v2222_v60 = vld [vmem:[%s3068_s6 + $0x164] ss:$16 sps:$4 sm:$0xff]  }
  0x8b   :  { %1433 = vmatpush1.bf16.msra.mxu0 %v2160_v22  ;;  %v2225_v61 = vld [vmem:[%s3068_s6 + $0x16c] ss:$16 sps:$4 sm:$0xff]   ;;  %v2220_v62 = vld [vmem:[%s3068_s6 + $0x160] ss:$16 sps:$4 sm:$0xff]   ;;  %v2223_v63 = vld [vmem:[%s3068_s6 + $0x168] ss:$16 sps:$4 sm:$0xff]  }
  0x8c   :  { %1474 = vmatpush1.bf16.msra.mxu1 %v2163_v23  ;;  %1434 = vmatprep.subr.bf16.mxu0 %v2168_v24  ;;  %v2228_v0 = vld [vmem:[%s3068_s6 + $0x144] ss:$16 sps:$4 sm:$0xff]   ;;  %v2231_v1 = vld [vmem:[%s3068_s6 + $0x14c] ss:$16 sps:$4 sm:$0xff]   ;;  %v2226_v2 = vld [vmem:[%s3068_s6 + $0x140] ss:$16 sps:$4 sm:$0xff]  }
  0x8d   :  { %1475 = vmatprep.subr.bf16.mxu1 %v2171_v25  ;;  %v2229_v3 = vld [vmem:[%s3068_s6 + $0x148] ss:$16 sps:$4 sm:$0xff]   ;;  %v2234_v4 = vld [vmem:[%s3068_s6 + $0x124] ss:$16 sps:$4 sm:$0xff]   ;;  %v2237_v5 = vld [vmem:[%s3068_s6 + $0x12c] ss:$16 sps:$4 sm:$0xff]  }
  0x8e   :  { %v2232_v6 = vld [vmem:[%s3068_s6 + $0x120] ss:$16 sps:$4 sm:$0xff]   ;;  %v2235_v7 = vld [vmem:[%s3068_s6 + $0x128] ss:$16 sps:$4 sm:$0xff]   ;;  %v2240_v8 = vld [vmem:[%s3068_s6 + $0x104] ss:$16 sps:$4 sm:$0xff]  }
  0x8f   :  { %1435 = vmatpush1.bf16.msra.mxu0 %v2166_v26  ;;  %v2243_v9 = vld [vmem:[%s3068_s6 + $0x10c] ss:$16 sps:$4 sm:$0xff]   ;;  %v2238_v10 = vld [vmem:[%s3068_s6 + $0x100] ss:$16 sps:$4 sm:$0xff]   ;;  %v2241_v11 = vld [vmem:[%s3068_s6 + $0x108] ss:$16 sps:$4 sm:$0xff]  }
  0x90   :  { %1476 = vmatpush1.bf16.msra.mxu1 %v2169_v27  ;;  %1436 = vmatprep.subr.bf16.mxu0 %v2174_v28  ;;  %v2244_v14 = vld [vmem:[%s3070_s8 + $0x78] sm:$0xff]   ;;  %v2959_v16 = vshrl.u32 %v182_v15, 7  ;;  %v180_v12 = vld [vmem:[%s3067_s5] sm:$0xf]  ;;  %s2282_s30 = smov [#allocation2]  }
  0x91   :  { %1477 = vmatprep.subr.bf16.mxu1 %v2177_v29  ;;  %v1086_v15 = vld [vmem:[%s3069_s7] sm:$0xf]  ;;  %s1708_s13 = sshll.u32 %s2282_s30, 4  ;;  %s1709_s13 = int_to_ptr.vmem [resolvable:$true] %s1708_s13 }
  0x92   :  { %v184_v17 = vsub.s32 0, %v2959_v16  ;;  %v188_v13 = vsub.s32 1, %v2959_v16  ;;  %p2265_p1 = scmp.lt.s32.totalorder %s1709_s13, %s1709_s13 }
  0x93   :  { %1437 = vmatpush1.bf16.msra.mxu0 %v2172_v30 }
  0x94   :  { %1478 = vmatpush1.bf16.msra.mxu1 %v2175_v31  ;;  %1438 = vmatprep.subr.bf16.mxu0 %v2180_v32  ;;  %v185_v18 = vrot.slane %v180_v12, %v184_v17  ;;  %v189_v19 = vrot.slane %v180_v12, %v188_v13  ;;  %v192_v32 = vsub.s32 2, %v2959_v16 }
  0x95   :  { %1479 = vmatprep.subr.bf16.mxu1 %v2183_v33  ;;  %v196_v33 = vsub.s32 3, %v2959_v16 }
  0x97   :  { %1439 = vmatpush1.bf16.msra.mxu0 %v2178_v34 }
  0x98   :  { %1480 = vmatpush1.bf16.msra.mxu1 %v2181_v35  ;;  %1440 = vmatprep.subr.bf16.mxu0 %v2186_v36  ;;  %v193_v36 = vrot.slane %v180_v12, %v192_v32 }
  0x99   :  { %1481 = vmatprep.subr.bf16.mxu1 %v2189_v37 }
  0x9b   :  { %1441 = vmatpush1.bf16.msra.mxu0 %v2184_v38 }
  0x9c   :  { %1482 = vmatpush1.bf16.msra.mxu1 %v2187_v39  ;;  %1442 = vmatprep.subr.bf16.mxu0 %v2192_v40  ;;  %v197_v39 = vrot.slane %v180_v12, %v196_v33 }
  0x9d   :  { %1483 = vmatprep.subr.bf16.mxu1 %v2195_v41 }
  0x9f   :  { %1443 = vmatpush1.bf16.msra.mxu0 %v2190_v42 }
  0xa0   :  { %1484 = vmatpush1.bf16.msra.mxu1 %v2193_v43  ;;  %1444 = vmatprep.subr.bf16.mxu0 %v2198_v44 }
  0xa1   :  { %1485 = vmatprep.subr.bf16.mxu1 %v2201_v45 }
  0xa3   :  { %1445 = vmatpush2.bf16.msra.mxu0 %v2196_v46  ;;  %v1012_v46 = vld [vmem:[%s3064_s2] sm:$0xff] }
  0xa4   :  { %1486 = vmatpush2.bf16.msra.mxu1 %v2199_v47  ;;  %1446 = vmatprep.subr.bf16.mxu0 %v2204_v48 }
  0xa5   :  { %1487 = vmatprep.subr.bf16.mxu1 %v2207_v49 }
  0xa7   :  { %1447 = vmatpush2.bf16.msra.mxu0 %v2202_v50  ;;  %v1013_v50 = vld [vmem:[%s3064_s2 + $0x8] sm:$0xff] }
  0xa8   :  { %1488 = vmatpush2.bf16.msra.mxu1 %v2205_v51  ;;  %1448 = vmatprep.subr.bf16.mxu0 %v2210_v52 }
  0xa9   :  { %1489 = vmatprep.subr.bf16.mxu1 %v2213_v53 }
  0xab   :  { %1449 = vmatpush2.bf16.msra.mxu0 %v2208_v54 }
  0xac   :  { %1490 = vmatpush2.bf16.msra.mxu1 %v2211_v55  ;;  %1450 = vmatprep.subr.bf16.mxu0 %v2216_v56 }
  0xad   :  { %1491 = vmatprep.subr.bf16.mxu1 %v2219_v57 }
  0xaf   :  { %1451 = vmatpush2.bf16.msra.mxu0 %v2214_v58 }
  0xb0   :  { %1492 = vmatpush2.bf16.msra.mxu1 %v2217_v59  ;;  %1452 = vmatprep.subr.bf16.mxu0 %v2222_v60 }
  0xb1   :  { %1493 = vmatprep.subr.bf16.mxu1 %v2225_v61  ;;  %v2245_v61 = vld [vmem:[%s3070_s8 + $0x38] sm:$0xff]  }
  0xb3   :  { %1453 = vmatpush2.bf16.msra.mxu0 %v2220_v62 }
  0xb4   :  { %1494 = vmatpush2.bf16.msra.mxu1 %v2223_v63  ;;  %1454 = vmatprep.subr.bf16.mxu0 %v2228_v0  ;;  %v2246_v63 = vld [vmem:[%s3070_s8 + $0x70] sm:$0xff]  }
  0xb5   :  { %1495 = vmatprep.subr.bf16.mxu1 %v2231_v1  ;;  %v2247_v0 = vld [vmem:[%s3070_s8 + $0x30] sm:$0xff]   ;;  %v2248_v1 = vld [vmem:[%s3070_s8 + $0x68] sm:$0xff]  }
  0xb7   :  { %1455 = vmatpush2.bf16.msra.mxu0 %v2226_v2  ;;  %v2249_v2 = vld [vmem:[%s3070_s8 + $0x28] sm:$0xff]  }
  0xb8   :  { %1496 = vmatpush2.bf16.msra.mxu1 %v2229_v3  ;;  %1456 = vmatprep.subr.bf16.mxu0 %v2234_v4  ;;  %v2250_v3 = vld [vmem:[%s3070_s8 + $0x60] sm:$0xff]  }
  0xb9   :  { %1497 = vmatprep.subr.bf16.mxu1 %v2237_v5  ;;  %v2251_v4 = vld [vmem:[%s3070_s8 + $0x20] sm:$0xff]   ;;  %v2252_v5 = vld [vmem:[%s3070_s8 + $0x58] sm:$0xff]  }
  0xbb   :  { %1457 = vmatpush2.bf16.msra.mxu0 %v2232_v6  ;;  %v2253_v6 = vld [vmem:[%s3070_s8 + $0x18] sm:$0xff]  }
  0xbc   :  { %1498 = vmatpush2.bf16.msra.mxu1 %v2235_v7  ;;  %1458 = vmatprep.subr.bf16.mxu0 %v2240_v8  ;;  %v2254_v7 = vld [vmem:[%s3070_s8 + $0x50] sm:$0xff]  }
  0xbd   :  { %1499 = vmatprep.subr.bf16.mxu1 %v2243_v9  ;;  %v2255_v8 = vld [vmem:[%s3070_s8 + $0x10] sm:$0xff]   ;;  %v2256_v9 = vld [vmem:[%s3070_s8 + $0x48] sm:$0xff]  }
  0xbf   :  { %1459 = vmatpush2.bf16.msra.mxu0 %v2238_v10  ;;  %v2257_v10 = vld [vmem:[%s3070_s8 + $0x8] sm:$0xff]  }
  0xc0   :  { %1500 = vmatpush2.bf16.msra.mxu1 %v2241_v11  ;;  %1933 = vmatprep.subr.bf16.mxu0 %v2244_v14  ;;  %v2258_v11 = vld [vmem:[%s3070_s8 + $0x40] sm:$0xff]  }
  0xc1   :  { %v2259_v14 = vld [vmem:[%s3070_s8] sm:$0xff]  }
 0x102   :  { %v876_v20 = vpop.f32.mrf.mxu0 }
 0x103   :  { %v917_v21 = vpop.f32.mrf.mxu1  ;;  %v877_v22 = vadd.f32 %v876_v20, %v185_v18 }
 0x104   :  { %v878_v23 = vpop.f32.mrf.mxu0 }
 0x105   :  { %v919_v24 = vpop.f32.mrf.mxu1  ;;  %v918_v25 = vadd.f32 %v917_v21, %v877_v22  ;;  %v879_v26 = vadd.f32 %v878_v23, %v189_v19  ;;  %v1099_v19 = vrot.slane %v1086_v15, %v192_v32  ;;  %v1103_v22 = vrot.slane %v1086_v15, %v196_v33  ;;  %v1517_v33 = vld [vmem:[%s3065_s3 + $0x8] sm:$0xff] }
 0x106   :  { %v880_v27 = vpop.f32.mrf.mxu0  ;;  %v1091_v23 = vrot.slane %v1086_v15, %v184_v17 }
 0x107   :  { %v921_v28 = vpop.f32.mrf.mxu1  ;;  %v920_v29 = vadd.f32 %v919_v24, %v879_v26  ;;  %v1006_v55 = vmax.f32 %v918_v25, 0.0  ;;  %v1095_v26 = vrot.slane %v1086_v15, %v188_v13 }
 0x108   :  { %v881_v30 = vpop.f32.mrf.mxu0  ;;  %v1516_v28 = vld [vmem:[%s3065_s3] sm:$0xff] }
 0x109   :  { %v922_v31 = vpop.f32.mrf.mxu1  ;;  %v1007_v56 = vmax.f32 %v920_v29, 0.0 }
 0x142   :  { %v958_v34 = vpop.f32.mrf.mxu0 }
 0x143   :  { %v999_v35 = vpop.f32.mrf.mxu1 }
 0x144   :  { %v959_v37 = vpop.f32.mrf.mxu0 }
 0x145   :  { %v1000_v38 = vpop.f32.mrf.mxu1 }
 0x146   :  { %v960_v40 = vpop.f32.mrf.mxu0 }
 0x147   :  { %v1001_v41 = vpop.f32.mrf.mxu1  ;;  %v961_v42 = vadd.f32 %v960_v40, %v193_v36 }
 0x148   :  { %v962_v43 = vpop.f32.mrf.mxu0 }
 0x149   :  { %v1002_v44 = vadd.f32 %v1001_v41, %v961_v42  ;;  %v963_v45 = vadd.f32 %v962_v43, %v197_v39  ;;  %v1003_v47 = vpop.f32.mrf.mxu1 }
 0x14b   :  { %v1008_v48 = vmax.f32 %v1002_v44, 0.0  ;;  %v1004_v49 = vadd.f32 %v1003_v47, %v963_v45 }
 0x14d   :  { %1010 = vst [vmem:[%s3073_s11] sm:$0xff] %v1008_v48  ;;  %v1014_v51 = vmul.f32 %v1012_v46, %v1008_v48  ;;  %v1009_v52 = vmax.f32 %v1004_v49, 0.0  ;;  %v1916_v46 = vld [vmem:[%s3071_s9] ss:$0 sm:$0xff] }
 0x14f   :  { %v1016_v53 = vadd.f32 1.0, %v1014_v51  ;;  %1011 = vst [vmem:[%s3073_s11 + $0x8] sm:$0xff] %v1009_v52  ;;  %v1015_v54 = vmul.f32 %v1013_v50, %v1009_v52 }
 0x151   :  { %v1017_v57 = vadd.f32 1.0, %v1015_v54  ;;  %v1018_v58 = vmul.f32 %v1016_v53, %v1006_v55 }
 0x153   :  { %v1019_v59 = vmul.f32 %v1017_v57, %v1007_v56  ;;  %v1020_v62 = vpack.c.bf16 %v1008_v48, %v1018_v58 }
 0x155   :  { %v1021_v60 = vpack.c.bf16 %v1009_v52, %v1019_v59 }
 0x157   :  { %1460 = vmatprep.mubr.bf16.mxu0 %v1021_v60  ;;  %1501 = vmatprep.mubr.bf16.mxu1 %v1021_v60 }
 0x158   :  { %1461 = vmatmul.mubr.bf16.vlgmr.msra.gmra.mxu0 %v1020_v62  ;;  %1502 = vmatmul.mubr.bf16.vlgmr.msra.gmra.mxu1 %v1020_v62 }
 0x159   :  { %1934 = vmatpush3.bf16.msra.mxu0 %v2245_v61 }
 0x15a   :  { %1935 = vmatprep.subr.bf16.mxu0 %v2246_v63 }
 0x15d   :  { %1936 = vmatpush3.bf16.msra.mxu0 %v2247_v0 }
 0x15e   :  { %1937 = vmatprep.subr.bf16.mxu0 %v2248_v1 }
 0x161   :  { %1938 = vmatpush3.bf16.msra.mxu0 %v2249_v2 }
 0x162   :  { %1939 = vmatprep.subr.bf16.mxu0 %v2250_v3 }
 0x165   :  { %1940 = vmatpush3.bf16.msra.mxu0 %v2251_v4 }
 0x166   :  { %1941 = vmatprep.subr.bf16.mxu0 %v2252_v5 }
 0x169   :  { %1942 = vmatpush3.bf16.msra.mxu0 %v2253_v6 }
 0x16a   :  { %1943 = vmatprep.subr.bf16.mxu0 %v2254_v7 }
 0x16d   :  { %1944 = vmatpush3.bf16.msra.mxu0 %v2255_v8 }
 0x16e   :  { %1945 = vmatprep.subr.bf16.mxu0 %v2256_v9 }
 0x171   :  { %1946 = vmatpush3.bf16.msra.mxu0 %v2257_v10 }
 0x172   :  { %1947 = vmatprep.subr.bf16.mxu0 %v2258_v11 }
 0x175   :  { %1948 = vmatpush3.bf16.msra.mxu0 %v2259_v14 }
 0x218   :  { %v1462_v12 = vpop.f32.mrf.mxu0  ;;  %v1503_v18 = vpop.f32.mrf.mxu1 }
 0x219   :  { %v1463_v34 = vadd.f32 %v1462_v12, %v1091_v23 }
 0x21a   :  { %v1464_v20 = vpop.f32.mrf.mxu0  ;;  %v1504_v21 = vpop.f32.mrf.mxu1 }
 0x21b   :  { %v1465_v17 = vadd.f32 %v1464_v20, %v1095_v26  ;;  %v1510_v37 = vmax.f32 %v1463_v34, 0.0 }
 0x21c   :  { %v1466_v24 = vpop.f32.mrf.mxu0  ;;  %v1505_v25 = vpop.f32.mrf.mxu1 }
 0x21d   :  { %v1506_v27 = vadd.f32 %v1505_v25, %v1099_v19  ;;  %v1511_v38 = vmax.f32 %v1465_v17, 0.0 }
 0x21e   :  { %v1467_v29 = vpop.f32.mrf.mxu0  ;;  %v1507_v30 = vpop.f32.mrf.mxu1 }
 0x21f   :  { %v1512_v31 = vmax.f32 %v1506_v27, 0.0  ;;  %v1508_v32 = vadd.f32 %v1507_v30, %v1103_v22 }
 0x221   :  { %1514 = vst [vmem:[%s3074_s12] sm:$0xff] %v1512_v31  ;;  %v1518_v16 = vmul.f32 %v1516_v28, %v1512_v31  ;;  %v1513_v13 = vmax.f32 %v1508_v32, 0.0 }
 0x223   :  { %v1520_v35 = vadd.f32 1.0, %v1518_v16  ;;  %1515 = vst [vmem:[%s3074_s12 + $0x8] sm:$0xff] %v1513_v13  ;;  %v1519_v36 = vmul.f32 %v1517_v33, %v1513_v13  ;;  %s2260_s12 = scalar_lea.vmem %s1709_s13, 128 }
 0x224   :  { %p2261_p0 = scmp.ne.s32.totalorder %s1709_s13, %s2260_s12  ;;  %p2266_p2 = scmp.lt.s32.totalorder %s2260_s12, %s2260_s12 }
 0x225   :  { %v1521_v39 = vadd.f32 1.0, %v1519_v36  ;;  %v1522_v40 = vmul.f32 %v1520_v35, %v1510_v37 }
 0x226   :  { %p2267_p3 = por %p2266_p2, %p2265_p1 }
 0x227   :  { %v1523_v41 = vmul.f32 %v1521_v39, %v1511_v38  ;;  %v1524_v43 = vpack.c.bf16 %v1522_v40, %v1522_v40 }
 0x228   :  { %p2268_p4 = pnand %p2267_p3, %p2261_p0 }
 0x229   :  { %v1525_v42 = vpack.c.bf16 %v1523_v41, %v1523_v41 }
 0x22b   :  { %1693 = vmatprep.mubr.bf16.mxu0 %v1525_v42 }
 0x22c   :  { %1694 = vmatmul.mubr.bf16.vlgmr.msra.gmra.mxu0 %v1524_v43 }
 0x2ec   :  { %v1949_v44 = vpop.f32.mrf.mxu0 }
 0x2ee   :  { %v1950_v45 = vpop.f32.mrf.mxu0 }
 0x2ef   :  { %v1951_v47 = vadd.f32 %v1950_v45, %v1949_v44 }
 0x2f0   :  { %v1952_v48 = vpop.f32.mrf.mxu0 }
 0x2f1   :  { %v1696_v49 = vadd.f32 %v1951_v47, %v1916_v46 }
 0x2f2   :  { %v1953_v50 = vpop.f32.mrf.mxu0 }
 0x2f3   :  { %1701 = vst [vmem:[#allocation2] sm:$0xff] %v1696_v49 }
 0x2f4   :  { %2271 = shalt.err (!%p2268_p4)
}
 0x2f5   :  { %1711 = dma.vmem_to_hbm [thread:$0]  %s1709_s13, 128, %s3072_s10, [#allocation3]  }
 0x2f6   :  { %2280 = dma.done.wait [#allocation3], 128  }
 0x2f7   :  { %2281 = vsyncadd [#allocation3], 4294967168 }
 0x2f8   :  { %1723 = vsyncpa [#allocation3], 1 }

</bundles_post_ra>
